<compile_context>
chip_gen: v7x
topology: tpu7x:2x2x1
jax: 0.10.0
libtpu: 0.0.40
codegen_flags: <defaults>
</compile_context>

<pallas_src>
import jax
import jax.numpy as jnp
from jax.experimental import pallas as pl
from jax.experimental.pallas import tpu as pltpu


def _bitlinear_kernel(w_rscale_ref, x_ref, w_ref, o_ref, xq_ref, inv_s_ref):
    # w_rscale_ref: (1,)  f32 SMEM  -> clamp(mean|W|, 1e-5) == 1 / w_scale
    # x_ref       : (tm, K) f32     -> input tile (full K per token)
    # w_ref       : (K, tn) bf16    -> ternary weight tile, values in {-1,0,+1}
    # o_ref       : (tm, tn) f32    -> output tile
    # xq_ref      : (tm, K) bf16 scratch -> quantized activations (integers)
    # inv_s_ref   : (tm, 1) f32 scratch  -> folded per-token dequant scale

    @pl.when(pl.program_id(1) == 0)
    def _quantize_activations():
        x = x_ref[...].astype(jnp.float32)
        absmax = jnp.maximum(jnp.max(jnp.abs(x), axis=-1, keepdims=True), 1e-5)
        s = 127.0 / absmax
        xq_ref[...] = jnp.clip(jnp.round(x * s), -128.0, 127.0).astype(jnp.bfloat16)
        # Fold both dequant scales (per-token 1/s and per-tensor 1/w_scale).
        inv_s_ref[...] = absmax * (w_rscale_ref[0] * (1.0 / 127.0))

    # Exact integer-valued bf16 matmul with f32 accumulation on the MXU;
    # weight is pre-transposed to (K, N) so no in-kernel transpose is needed
    # and the output stays lane-dense.
    acc = jnp.dot(xq_ref[...], w_ref[...], preferred_element_type=jnp.float32)
    o_ref[...] = (acc * inv_s_ref[...]).astype(o_ref.dtype)


def bitlinear_forward(x, weight, *, tm_max=256, tn_max=512):
    """x: (..., in_features) float, weight: (out_features, in_features) float."""
    in_features = weight.shape[1]
    out_features = weight.shape[0]
    lead_shape = x.shape[:-1]

    x2d = x.reshape(-1, in_features).astype(jnp.float32)
    tokens = x2d.shape[0]

    # ---- weight quantization hoisted out of the kernel (GLOBAL absmean) ----
    w = weight.astype(jnp.float32)
    w_absmean = jnp.maximum(jnp.mean(jnp.abs(w)), 1e-5)          # == 1 / w_scale
    w_tern = jnp.clip(jnp.round(w * (1.0 / w_absmean)), -1.0, 1.0)
    w_kn = w_tern.T.astype(jnp.bfloat16)                          # (K, N), exact
    w_rscale = jnp.reshape(w_absmean, (1,)).astype(jnp.float32)

    # ---- tile selection: full dim if small, else lane-aligned tile + pad ----
    def _pick(dim, max_tile):
        if dim <= max_tile:
            return dim, dim                    # block == full dim is allowed
        padded = pl.cdiv(dim, max_tile) * max_tile
        return max_tile, padded

    tm, tokens_p = _pick(tokens, tm_max)       # tm_max multiple of 8
    tn, n_p = _pick(out_features, tn_max)      # tn_max multiple of 128
    if tokens_p != tokens:
        x2d = jnp.pad(x2d, ((0, tokens_p - tokens), (0, 0)))
    if n_p != out_features:
        w_kn = jnp.pad(w_kn, ((0, 0), (0, n_p - out_features)))

    grid = (tokens_p // tm, n_p // tn)

    cost = pl.CostEstimate(
        flops=2 * tokens_p * n_p * in_features,
        transcendentals=0,
        bytes_accessed=(tokens_p * in_features * 4      # x (f32)
                        + in_features * n_p * 2          # w (bf16)
                        + tokens_p * n_p * 4),           # out (f32)
    )

    out = pl.pallas_call(
        _bitlinear_kernel,
        out_shape=jax.ShapeDtypeStruct((tokens_p, n_p), jnp.float32),
        grid_spec=pltpu.PrefetchScalarGridSpec(
            num_scalar_prefetch=1,                       # w_rscale -> SMEM
            grid=grid,
            in_specs=[
                pl.BlockSpec((tm, in_features), lambda i, j, s: (i, 0)),
                pl.BlockSpec((in_features, tn), lambda i, j, s: (0, j)),
            ],
            out_specs=pl.BlockSpec((tm, tn), lambda i, j, s: (i, j)),
            scratch_shapes=[
                pltpu.VMEM((tm, in_features), jnp.bfloat16),   # cached x_int
                pltpu.VMEM((tm, 1), jnp.float32),              # folded scale
            ],
        ),
        compiler_params=pltpu.CompilerParams(
            dimension_semantics=("parallel", "arbitrary"),
            vmem_limit_bytes=48 * 1024 * 1024,           # headroom, < v7x 64 MiB
        ),
        cost_estimate=cost,
    )(w_rscale, x2d, w_kn)

    out = out[:tokens, :out_features]
    return out.reshape(*lead_shape, out_features)


def _reference(x, weight):
    """Pure-JAX reference for correctness check (mirrors the torch module)."""
    x = x.astype(jnp.float32)
    w = weight.astype(jnp.float32)
    qb = 127.0
    xs = qb / jnp.maximum(jnp.max(jnp.abs(x), axis=-1, keepdims=True), 1e-5)
    x_q = jnp.clip(jnp.round(x * xs), -128.0, 127.0) / xs
    ws = 1.0 / jnp.maximum(jnp.mean(jnp.abs(w)), 1e-5)
    w_q = jnp.clip(jnp.round(w * ws), -1.0, 1.0) / ws
    return x_q @ w_q.T


if __name__ == "__main__":
    key = jax.random.PRNGKey(0)
    kx, kw = jax.random.split(key)

    batch, seq, in_features, out_features = 2, 8, 32, 64

    # Deterministic "parameters": weight ~ N(0,1) * 0.02 (as in __init__), bias=False.
    weight = jax.random.normal(kw, (out_features, in_features), dtype=jnp.float32) * 0.02
    x = jax.random.normal(kx, (batch, seq, in_features), dtype=jnp.float32)

    out = bitlinear_forward(x, weight)
    out = jax.block_until_ready(out)

    ref = _reference(x.reshape(-1, in_features), weight).reshape(
        batch, seq, out_features
    )
    assert out.shape == (batch, seq, out_features)
    assert jnp.allclose(out, ref, atol=1e-4, rtol=1e-4), "mismatch vs reference"

    print("KERNEL_OK")
</pallas_src>

<mosaic_0001>
module attributes {stable_mosaic.version = 11 : i64} {
  func.func @_bitlinear_kernel(%arg0: i32, %arg1: i32, %arg2: memref<1xf32, #tpu.memory_space<smem>>, %arg3: memref<16x32xf32, #tpu.memory_space<vmem>>, %arg4: memref<32x64xbf16, #tpu.memory_space<vmem>>, %arg5: memref<16x64xf32, #tpu.memory_space<vmem>>, %arg6: memref<16x32xbf16, #tpu.memory_space<vmem>>, %arg7: memref<16x1xf32, #tpu.memory_space<vmem>>) attributes {dimension_semantics = [#tpu.dimension_semantics<parallel>, #tpu.dimension_semantics<arbitrary>], iteration_bounds = array<i64: 1, 1>, scalar_prefetch = 1 : i64, scratch_operands = 2 : i64, tpu.core_type = #tpu.core_type<tc>, window_params = [{transform_indices = @transform_0, window_bounds = array<i64: 16, 32>}, {transform_indices = @transform_1, window_bounds = array<i64: 32, 64>}, {transform_indices = @transform_2, window_bounds = array<i64: 16, 64>}]} {
    %c0_i32 = arith.constant 0 : i32
    %0 = arith.cmpi eq, %arg1, %c0_i32 : i32
    %1 = arith.extui %0 : i1 to i32
    %c0_i32_0 = arith.constant 0 : i32
    %2 = arith.cmpi ne, %1, %c0_i32_0 : i32
    scf.if %2 {
      %c0_8 = arith.constant 0 : index
      %c0_9 = arith.constant 0 : index
      %10 = vector.load %arg3[%c0_8, %c0_9] : memref<16x32xf32, #tpu.memory_space<vmem>>, vector<16x32xf32>
      %11 = math.absf %10 : vector<16x32xf32>
      %cst_10 = arith.constant dense<0xFF800000> : vector<16xf32>
      %12 = vector.multi_reduction <maximumf>, %11, %cst_10 [1] : vector<16x32xf32> to vector<16xf32>
      %13 = vector.shape_cast %12 : vector<16xf32> to vector<16x1xf32>
      %cst_11 = arith.constant 9.99999974E-6 : f32
      %14 = vector.broadcast %cst_11 : f32 to vector<16x1xf32>
      %15 = arith.maximumf %13, %14 : vector<16x1xf32>
      %cst_12 = arith.constant 1.270000e+02 : f32
      %16 = vector.broadcast %cst_12 : f32 to vector<16x1xf32>
      %17 = arith.divf %16, %15 : vector<16x1xf32>
      %18 = vector.broadcast %17 : vector<16x1xf32> to vector<16x32xf32>
      %19 = arith.mulf %10, %18 : vector<16x32xf32>
      %20 = math.roundeven %19 : vector<16x32xf32>
      %cst_13 = arith.constant -1.280000e+02 : f32
      %cst_14 = arith.constant 1.270000e+02 : f32
      %21 = vector.broadcast %cst_13 : f32 to vector<16x32xf32>
      %22 = arith.maximumf %21, %20 : vector<16x32xf32>
      %23 = vector.broadcast %cst_14 : f32 to vector<16x32xf32>
      %24 = arith.minimumf %23, %22 : vector<16x32xf32>
      %25 = arith.truncf %24 : vector<16x32xf32> to vector<16x32xbf16>
      %c0_15 = arith.constant 0 : index
      %c0_16 = arith.constant 0 : index
      %26 = vector.load %arg6[%c0_15, %c0_16] : memref<16x32xbf16, #tpu.memory_space<vmem>>, vector<16x32xbf16>
      tpu.vector_store %arg6[%c0_15, %c0_16], %25 {strides = array<i32>} : memref<16x32xbf16, #tpu.memory_space<vmem>>, vector<16x32xbf16>,
      %c0_17 = arith.constant 0 : index
      %27 = memref.load %arg2[%c0_17] : memref<1xf32, #tpu.memory_space<smem>>
      %cst_18 = arith.constant 0.00787401571 : f32
      %28 = arith.mulf %27, %cst_18 : f32
      %29 = vector.broadcast %28 : f32 to vector<16x1xf32>
      %30 = arith.mulf %15, %29 : vector<16x1xf32>
      %c0_19 = arith.constant 0 : index
      %c0_20 = arith.constant 0 : index
      %31 = vector.load %arg7[%c0_19, %c0_20] : memref<16x1xf32, #tpu.memory_space<vmem>>, vector<16x1xf32>
      tpu.vector_store %arg7[%c0_19, %c0_20], %30 {strides = array<i32>} : memref<16x1xf32, #tpu.memory_space<vmem>>, vector<16x1xf32>,
    } else {
    }
    %c0 = arith.constant 0 : index
    %c0_1 = arith.constant 0 : index
    %3 = vector.load %arg6[%c0, %c0_1] : memref<16x32xbf16, #tpu.memory_space<vmem>>, vector<16x32xbf16>
    %c0_2 = arith.constant 0 : index
    %c0_3 = arith.constant 0 : index
    %4 = vector.load %arg4[%c0_2, %c0_3] : memref<32x64xbf16, #tpu.memory_space<vmem>>, vector<32x64xbf16>
    %cst = arith.constant dense<0.000000e+00> : vector<16x64xf32>
    %5 = tpu.matmul %3, %4, %cst {dimension_numbers = #tpu.dot_dimension_numbers<[1], [0], [0], [1], [0, 0, 1, 1], [], []>} : vector<16x32xbf16>, vector<32x64xbf16>, vector<16x64xf32> -> vector<16x64xf32>
    %c0_4 = arith.constant 0 : index
    %c0_5 = arith.constant 0 : index
    %6 = vector.load %arg7[%c0_4, %c0_5] : memref<16x1xf32, #tpu.memory_space<vmem>>, vector<16x1xf32>
    %7 = vector.broadcast %6 : vector<16x1xf32> to vector<16x64xf32>
    %8 = arith.mulf %5, %7 : vector<16x64xf32>
    %c0_6 = arith.constant 0 : index
    %c0_7 = arith.constant 0 : index
    %9 = vector.load %arg5[%c0_6, %c0_7] : memref<16x64xf32, #tpu.memory_space<vmem>>, vector<16x64xf32>
    tpu.vector_store %arg5[%c0_6, %c0_7], %8 {strides = array<i32>} : memref<16x64xf32, #tpu.memory_space<vmem>>, vector<16x64xf32>,
    return
  }
  func.func @transform_0(%arg0: i32, %arg1: i32, %arg2: memref<1xf32, #tpu.memory_space<smem>>) -> (i32, i32) {
    %c0_i32 = arith.constant 0 : i32
    %c0_i32_0 = arith.constant 0 : i32
    return %arg0, %c0_i32 : i32, i32
  }
  func.func @transform_1(%arg0: i32, %arg1: i32, %arg2: memref<1xf32, #tpu.memory_space<smem>>) -> (i32, i32) {
    %c0_i32 = arith.constant 0 : i32
    %c0_i32_0 = arith.constant 0 : i32
    return %c0_i32, %arg1 : i32, i32
  }
  func.func @transform_2(%arg0: i32, %arg1: i32, %arg2: memref<1xf32, #tpu.memory_space<smem>>) -> (i32, i32) {
    %c0_i32 = arith.constant 0 : i32
    return %arg0, %arg1 : i32, i32
  }
}

</mosaic_0001>

<bundles_post_ra>
// kernel: tpu_custom_call.1
= control target key start
LH: loop header
LB: loop body
LE: loop exit
PB: predicated region body
PF: predicated region fallthrough
CT: control target
= control target key end

     0   :  { %9 = vsyncpa [#allocation7], 0  ;;  %s364_s0 = inlined_call_operand.<no memory space> [shape: f32[1], index: 0, kind: input, shape index: {}]   ;;  %s365_s1 = inlined_call_operand.hbm [shape: f32[16,32], index: 1, kind: input, shape index: {}]   ;;  %s366_s2 = inlined_call_operand.hbm [shape: bf16[32,64], index: 2, kind: input, shape index: {}]   ;;  %s367_s3 = inlined_call_operand.hbm [shape: f32[16,64], index: 3, kind: output, shape index: {}]  }
   0x1   :  { %10 = vsyncpa [#allocation10], 0 }
   0x2   :  { %11 = vsyncpa [#allocation8], 0  ;;  %s285_s12 = smov [#allocation6]   ;;  %s213_s16 = scalar_lea.hbm %s365_s1, 256 }
   0x3   :  { %s17_s13 = sshll.u32 %s285_s12, 4  ;;  %p214_p0 = scmp.ne.s32.totalorder %s365_s1, %s213_s16  ;;  %s18_s13 = int_to_ptr.vmem [resolvable:$true] %s17_s13 }
   0x4   :  { %p217_p1 = scmp.lt.u32.totalorder %s213_s16, %s365_s1 }
   0x6   :  { %p219_p2 = pnand %p217_p1, %p214_p0 }
   0x8   :  { %222 = shalt.err (!%p219_p2)
}
   0x9   :  { %s223_s21 = scalar_lea.vmem %s18_s13, 256  ;;  %p228_p4 = scmp.lt.s32.totalorder %s18_s13, %s18_s13 }
   0xa   :  { %p224_p3 = scmp.ne.s32.totalorder %s18_s13, %s223_s21  ;;  %p229_p5 = scmp.lt.s32.totalorder %s223_s21, %s223_s21 }
   0xc   :  { %p230_p6 = por %p229_p5, %p228_p4 }
   0xe   :  { %p231_p7 = pnand %p230_p6, %p224_p3 }
  0x10   :  { %234 = shalt.err (!%p231_p7)
}
  0x11   :  { %s286_s22 = smov 128   ;;  %s287_s23 = smov 8  }
  0x12   :  { %23 = dma.hbm_to_vmem [thread:$0]  %s365_s1, 256, %s18_s13, [#allocation7], %s286_s22, %s286_s22, %s287_s23  }
  0x13   :  { %s288_s26 = smov [#allocation9]   ;;  %s235_s30 = scalar_lea.hbm %s366_s2, 256 }
  0x14   :  { %s29_s27 = sshll.u32 %s288_s26, 4  ;;  %p236_p8 = scmp.ne.s32.totalorder %s366_s2, %s235_s30  ;;  %s30_s27 = int_to_ptr.vmem [resolvable:$true] %s29_s27 }
  0x15   :  { %p239_p9 = scmp.lt.u32.totalorder %s235_s30, %s366_s2 }
  0x17   :  { %p241_p10 = pnand %p239_p9, %p236_p8 }
  0x19   :  { %244 = shalt.err (!%p241_p10)
}
  0x1a   :  { %s245_s8 = scalar_lea.vmem %s30_s27, 256  ;;  %p250_p12 = scmp.lt.s32.totalorder %s30_s27, %s30_s27 }
  0x1b   :  { %p246_p11 = scmp.ne.s32.totalorder %s30_s27, %s245_s8  ;;  %p251_p13 = scmp.lt.s32.totalorder %s245_s8, %s245_s8 }
  0x1d   :  { %p252_p0 = por %p251_p13, %p250_p12 }
  0x1f   :  { %p253_p1 = pnand %p252_p0, %p246_p11 }
  0x21   :  { %256 = shalt.err (!%p253_p1)
}
  0x22   :  { %s289_s1 = smov 64   ;;  %s290_s9 = smov 4  }
  0x23   :  { %35 = dma.hbm_to_vmem [thread:$0]  %s366_s2, 256, %s30_s27, [#allocation10], %s289_s1, %s289_s1, %s290_s9  }
  0x24   :  { %279 = dma.done.wait [#allocation7], 256  }
  0x25   :  { %280 = vsyncadd [#allocation7], 4294967040 }
  0x26   :  { %281 = dma.done.wait [#allocation10], 256  }
  0x27   :  { %282 = vsyncadd [#allocation10], 4294967040  ;;  %v47_v0 = vld [vmem:[#allocation6] sm:$0xff]  ;;  %vm51_vm0 = vcmask 261120   ;;  %v48_v1 = vld [vmem:[#allocation6 + $0x8] sm:$0xff]  ;;  %v291_v6 = vmov 0  }
  0x28   :  { %v49_v2 = vand.u32 2147483647, %v47_v0  ;;  %v50_v3 = vand.u32 2147483647, %v48_v1  ;;  %205 = vset.pattern.permute.xlu1 %v291_v6  ;;  %206 = vset.pattern.permute.xlu0 %v291_v6  ;;  %v207_v7 = vld [vmem:[#allocation9] sm:$0xff]   ;;  %v292_v8 = vmov 0.0  }
  0x29   :  { %185 = vmatprep.subr.bf16.mxu0 %v292_v8  ;;  %v208_v9 = vld [vmem:[#allocation9 + $0x8] sm:$0xff]   ;;  %vm293_vm1 = vmmov 0   ;;  %s75_s13 = smul.f32 0.007874016, %s364_s0  ;;  %vm79_vm2 = vcmask 7168   ;;  %vm158_vm3 = vcmask 523264  }
  0x2a   :  { %v52_v4 = vsel %vm51_vm0, %v49_v2, -inf  ;;  %v55_v5 = vsel %vm51_vm0, %v50_v3, -inf  ;;  %186 = vmatpush3.bf16.msra.mxu0 %v207_v7  ;;  %189 = vmatprep.mubr.msk.bf16.mxu0 %vm293_vm1, %v292_v8  ;;  %s294_s0 = smov [#allocation11]  }
  0x2b   :  { %53 = vmax.xlane.f32.xlu0 %v52_v4  ;;  %187 = vmatprep.subr.bf16.mxu0 %v292_v8  ;;  %v76_v10 = vstv %s75_s13  ;;  %s166_s14 = sshll.u32 %s294_s0, 4  ;;  %s167_s14 = int_to_ptr.vmem [resolvable:$true] %s166_s14 }
  0x2c   :  { %s257_s15 = scalar_lea.vmem %s167_s14, 256  ;;  %p262_p3 = scmp.lt.s32.totalorder %s167_s14, %s167_s14 }
  0x2d   :  { %p258_p2 = scmp.ne.s32.totalorder %s167_s14, %s257_s15  ;;  %p263_p4 = scmp.lt.s32.totalorder %s257_s15, %s257_s15 }
  0x2e   :  { %188 = vmatpush3.bf16.msra.mxu0 %v208_v9 }
  0x2f   :  { %56 = vmax.xlane.f32.xlu0 %v55_v5  ;;  %p264_p5 = por %p263_p4, %p262_p3 }
  0x31   :  { %p265_p6 = pnand %p264_p5, %p258_p2 }
  0xb8   :  { %v54_v11 = vpop.xlane.xlu0 %53 }
  0xb9   :  { %v58_v12 = vmax.f32 %v54_v11, 1e-05 }
  0xbb   :  { %209 = vrcp.f32 %v58_v12  ;;  %v77_v13 = vmul.f32 %v76_v10, %v58_v12 }
  0xbc   :  { %v57_v14 = vpop.xlane.xlu0 %56 }
  0xbd   :  { %80 = vst.msk [vmem:[#allocation3] sm:$0xff] %vm79_vm2, %v77_v13  ;;  %v59_v15 = vmax.f32 %v57_v14, 1e-05 }
  0xbf   :  { %211 = vrcp.f32 %v59_v15  ;;  %v78_v16 = vmul.f32 %v76_v10, %v59_v15 }
  0xc1   :  { %81 = vst.msk [vmem:[#allocation3 + $0x8] sm:$0xff] %vm79_vm2, %v78_v16 }
  0xc4   :  { %v144_v17 = vld [vmem:[#allocation3] sm:$0xff] }
  0xc5   :  { %v210_v18 = vpop.eup %209  ;;  %148 = vperm.xlu1 %205, %v144_v17  }
  0xc6   :  { %v61_v19 = vmul.f32 127.0, %v210_v18 }
  0xc8   :  { %v64_v20 = vmul.f32 %v61_v19, %v47_v0  ;;  %v145_v21 = vld [vmem:[#allocation3 + $0x8] sm:$0xff] }
  0xc9   :  { %v212_v22 = vpop.eup %211  ;;  %153 = vperm.xlu1 %205, %v145_v21  }
  0xca   :  { %v193_v23 = vround.rtne.f32 %v64_v20  ;;  %v63_v24 = vmul.f32 127.0, %v212_v22 }
  0xcc   :  { %v65_v25 = vmul.f32 %v63_v24, %v48_v1  ;;  %v68_v26 = vmax.f32 %v193_v23, -128.0 }
  0xce   :  { %v194_v27 = vround.rtne.f32 %v65_v25  ;;  %v70_v29 = vmin.f32 %v68_v26, 127.0 }
  0xd0   :  { %v69_v28 = vmax.f32 %v194_v27, -128.0 }
  0xd2   :  { %v71_v30 = vmin.f32 %v69_v28, 127.0 }
  0xd4   :  { %v72_v31 = vpack.c.bf16 %v71_v30, %v70_v29 }
  0xd6   :  { %73 = vst.msk [vmem:[#allocation2] sm:$0xff] %vm51_vm0, %v72_v31 }
  0xdd   :  { %v82_v32 = vld [vmem:[#allocation2] sm:$0xff] }
  0xde   :  { %190 = vmatmul.mubr.msk.bf16.vlgmr.msra.gmra.mrb[0].mxu0 %vm51_vm0, %v82_v32 }
 0x144   :  { %v149_v33 = vpop.permute.xlu1 %148 }
 0x148   :  { %v154_v37 = vpop.permute.xlu1 %153 }
 0x1b1   :  { %v137_v34 = vpop.f32.mrb[0].mxu0 }
 0x1b2   :  { %v156_v35 = vmul.f32 %v149_v33, %v137_v34  ;;  %v191_v36 = vpop.f32.mrb[1].mxu0 }
 0x1b3   :  { %v140_v38 = vpop.f32.mrb[2].mxu0 }
 0x1b4   :  { %v157_v39 = vmul.f32 %v154_v37, %v140_v38  ;;  %v192_v40 = vpop.f32.mrb[3].mxu0  ;;  %159 = vst.msk [vmem:[#allocation11] sm:$0xff] %vm158_vm3, %v156_v35 }
 0x1b6   :  { %160 = vst.msk [vmem:[#allocation11 + $0x8] sm:$0xff] %vm158_vm3, %v157_v39 }
 0x1b7   :  { %268 = shalt.err (!%p265_p6)
}
 0x1b8   :  { %s269_s18 = scalar_lea.hbm %s367_s3, 256 }
 0x1b9   :  { %p270_p7 = scmp.ne.s32.totalorder %s367_s3, %s269_s18  ;;  %p273_p8 = scmp.lt.u32.totalorder %s269_s18, %s367_s3 }
 0x1bb   :  { %p275_p9 = pnand %p273_p8, %p270_p7 }
 0x1bd   :  { %278 = shalt.err (!%p275_p9)
}
 0x1be   :  { %172 = dma.vmem_to_hbm [thread:$0]  %s167_s14, 256, %s367_s3, [#allocation8], %s286_s22, %s286_s22, %s287_s23  }
 0x1bf   :  { %283 = dma.done.wait [#allocation8], 256  }
 0x1c0   :  { %284 = vsyncadd [#allocation8], 4294967040 }
 0x1c1   :  { %176 = vsyncpa [#allocation7], 1 }
 0x1c2   :  { %177 = vsyncpa [#allocation10], 1 }
 0x1c3   :  { %178 = vsyncpa [#allocation8], 1 }

</bundles_post_ra>
